<compile_context>
chip_gen: v7x
topology: tpu7x:2x2x1
jax: 0.10.0
libtpu: 0.0.40
codegen_flags: <defaults>
</compile_context>

<pallas_src>
import functools

import jax
import jax.numpy as jnp
from jax.experimental import pallas as pl
from jax.experimental.pallas import tpu as pltpu

INPUT_DIM = 17
HIDDEN_DIM = 64
OUTPUT_DIM = 1
DEMO_DIM = 4


def _round_up(a, b):
    return (a + b - 1) // b * b


# ---------------------------------------------------------------------------
# Pallas kernel
#   grid = (batch_tiles [parallel], time_chunks [arbitrary])
#   hidden state h lives in a VMEM scratch accumulator across time chunks.
# ---------------------------------------------------------------------------
def _gru_forward_kernel(
    maxlen_ref,     # SMEM (1,)      i32   scalar prefetch: max(lens)
    lens_ref,       # (Bt, 1)        i32
    x_ref,          # (Tc, Bt, I)    f32   current time chunk
    wih_t_ref,      # (I, 3H)        f32   w_ih^T, gate order [r|z|n]
    whh_r_ref,      # (H, H)         f32   per-gate w_hh^T
    whh_z_ref,      # (H, H)         f32
    whh_n_ref,      # (H, H)         f32
    gbias_ref,      # (1, 3H)        f32   [b_ih_r+b_hh_r | b_ih_z+b_hh_z | b_ih_n]
    bhh_n_ref,      # (1, H)         f32   b_hh_n (kept separate: inside r*(...))
    *rest,
    use_demo: bool,
):
    if use_demo:
        (wproj_t_ref, bproj_ref, wdh_ref, wdd_ref, bd_ref, demo_ref,
         o_ref, h_ref, gir_ref, giz_ref, gin_ref) = rest
    else:
        (wl_t_ref, bl_ref,
         o_ref, h_ref, gir_ref, giz_ref, gin_ref) = rest

    c = pl.program_id(1)
    n_chunks = pl.num_programs(1)
    Tc, Bt, Iin = x_ref.shape
    H = whh_r_ref.shape[0]

    max_len = maxlen_ref[0]
    chunk_start = c * Tc

    # --- init hidden state at the first time chunk of every batch tile ------
    @pl.when(c == 0)
    def _init():
        h_ref[...] = jnp.zeros_like(h_ref)

    # --- recurrence over this time chunk (skip fully-padded chunks) ---------
    @pl.when(chunk_start < max_len)
    def _compute_chunk():
        # Hoisted input projection: ONE (Tc*Bt, I) x (I, 3H) matmul for the
        # whole chunk with r/z biases folded in; split per gate once so the
        # per-step reads are lane-offset-0 (Bt, H) slabs.
        xf = x_ref[...].reshape(Tc * Bt, Iin)
        gi = (jnp.dot(xf, wih_t_ref[...], preferred_element_type=jnp.float32)
              + gbias_ref[...])
        gir_ref[...] = gi[:, 0 * H:1 * H]
        giz_ref[...] = gi[:, 1 * H:2 * H]
        gin_ref[...] = gi[:, 2 * H:3 * H]

        whh_r = whh_r_ref[...]
        whh_z = whh_z_ref[...]
        whh_n = whh_n_ref[...]
        bhh_n = jnp.broadcast_to(bhh_n_ref[...], (Bt, H))   # hoisted broadcast
        lens = lens_ref[...]                                 # (Bt, 1) i32

        n_steps = jnp.minimum(max_len - chunk_start, Tc)

        @pl.loop(0, n_steps)
        def _step(i):
            row = pl.multiple_of(i * Bt, Bt)   # Bt is a multiple of 8
            h = h_ref[...]
            gh_r = jnp.dot(h, whh_r, preferred_element_type=jnp.float32)
            gh_z = jnp.dot(h, whh_z, preferred_element_type=jnp.float32)
            gh_n = jnp.dot(h, whh_n, preferred_element_type=jnp.float32)
            r = jax.nn.sigmoid(gir_ref[pl.ds(row, Bt), :] + gh_r)
            z = jax.nn.sigmoid(giz_ref[pl.ds(row, Bt), :] + gh_z)
            n = jnp.tanh(gin_ref[pl.ds(row, Bt), :] + r * (gh_n + bhh_n))
            h_new = (1.0 - z) * n + z * h
            # pack_padded_sequence semantics: freeze rows once t >= lens[b].
            t_glob = chunk_start + i
            h_ref[...] = jnp.where(t_glob < lens, h_new, h)

    # --- output head on the final chunk --------------------------------------
    @pl.when(c == n_chunks - 1)
    def _head():
        hn = h_ref[...]
        # TODO(synk): nn.Dropout(p=1-keep_prob) is identity at inference time;
        # training-mode stochastic dropout is not implemented here.
        if use_demo:
            demo_embed = jnp.tanh(
                jnp.dot(demo_ref[...], wproj_t_ref[...],
                        preferred_element_type=jnp.float32) + bproj_ref[...])
            # split l_demo_out weight -> no (B, 2H) concatenate / lane relayout
            logits = (jnp.dot(hn, wdh_ref[...], preferred_element_type=jnp.float32)
                      + jnp.dot(demo_embed, wdd_ref[...],
                                preferred_element_type=jnp.float32)
                      + bd_ref[...])
        else:
            logits = (jnp.dot(hn, wl_t_ref[...], preferred_element_type=jnp.float32)
                      + bl_ref[...])
        o_ref[...] = jax.nn.sigmoid(logits)


# ---------------------------------------------------------------------------
# Wrapper (glue): layout plumbing + pallas_call
# ---------------------------------------------------------------------------
def gru_forward(params, x, lens, demo=None, *, t_chunk=128):
    """x: (B, T, I) f32; lens: (B,) int; demo: (B, D) f32 or None."""
    B, T, Iin = x.shape
    H = HIDDEN_DIM
    O = OUTPUT_DIM
    use_demo = demo is not None

    # ---- batch padding / tiling (>= 8 sublanes; 128-row tiles when large) ---
    if B <= 128:
        bt = _round_up(B, 8)
        b_pad = bt
    else:
        bt = 128
        b_pad = _round_up(B, 128)
    n_btiles = b_pad // bt

    # ---- time padding / chunking --------------------------------------------
    tc = min(_round_up(T, 8), int(t_chunk))
    t_pad = _round_up(T, tc)
    n_chunks = t_pad // tc

    # ---- inputs --------------------------------------------------------------
    x_tbi = jnp.transpose(x.astype(jnp.float32), (1, 0, 2))          # (T, B, I)
    x_tbi = jnp.pad(x_tbi, ((0, t_pad - T), (0, b_pad - B), (0, 0)))  # (Tp,Bp,I)
    lens_i = lens.astype(jnp.int32)
    lens2 = jnp.pad(lens_i, (0, b_pad - B)).reshape(b_pad, 1)         # padded rows: len 0
    max_len = jnp.clip(jnp.max(lens_i), 0, T).astype(jnp.int32).reshape(1)

    # ---- GRU weights: PyTorch layout (3H, I)/(3H, H), gate order [r, z, n] ---
    w_ih = params["w_ih"].astype(jnp.float32)
    w_hh = params["w_hh"].astype(jnp.float32)
    b_ih = params["b_ih"].astype(jnp.float32)
    b_hh = params["b_hh"].astype(jnp.float32)

    wih_t = w_ih.T                                                    # (I, 3H)
    whh_r_t = w_hh[0 * H:1 * H].T                                     # (H, H)
    whh_z_t = w_hh[1 * H:2 * H].T
    whh_n_t = w_hh[2 * H:3 * H].T
    g_bias = jnp.concatenate(
        [b_ih[:2 * H] + b_hh[:2 * H], b_ih[2 * H:]]).reshape(1, 3 * H)
    bhh_n = b_hh[2 * H:].reshape(1, H)

    def _const_spec(shape):
        zeros = (0,) * len(shape)
        return pl.BlockSpec(shape, lambda b, c, ml: zeros)

    common_args = (lens2, x_tbi, wih_t, whh_r_t, whh_z_t, whh_n_t, g_bias, bhh_n)
    common_specs = [
        pl.BlockSpec((bt, 1), lambda b, c, ml: (b, 0)),               # lens
        pl.BlockSpec((tc, bt, Iin), lambda b, c, ml: (c, b, 0)),      # x chunk
        _const_spec((Iin, 3 * H)),
        _const_spec((H, H)), _const_spec((H, H)), _const_spec((H, H)),
        _const_spec((1, 3 * H)),
        _const_spec((1, H)),
    ]

    if use_demo:
        wd = params["w_demo_out"].astype(jnp.float32)                 # (O, 2H)
        demo_pad = jnp.pad(demo.astype(jnp.float32), ((0, b_pad - B), (0, 0)))
        head_args = (
            params["w_proj"].astype(jnp.float32).T,                   # (D, H)
            params["b_proj"].astype(jnp.float32).reshape(1, H),
            wd[:, :H].T,                                              # (H, O)
            wd[:, H:].T,                                              # (H, O)
            params["b_demo_out"].astype(jnp.float32).reshape(1, O),
            demo_pad,                                                 # (Bp, D)
        )
        head_specs = [
            _const_spec((DEMO_DIM, H)),
            _const_spec((1, H)),
            _const_spec((H, O)),
            _const_spec((H, O)),
            _const_spec((1, O)),
            pl.BlockSpec((bt, DEMO_DIM), lambda b, c, ml: (b, 0)),
        ]
    else:
        head_args = (
            params["w_out"].astype(jnp.float32).T,                    # (H, O)
            params["b_out"].astype(jnp.float32).reshape(1, O),
        )
        head_specs = [_const_spec((H, O)), _const_spec((1, O))]

    kernel = functools.partial(_gru_forward_kernel, use_demo=use_demo)

    grid_spec = pltpu.PrefetchScalarGridSpec(
        num_scalar_prefetch=1,
        grid=(n_btiles, n_chunks),
        in_specs=common_specs + head_specs,
        out_specs=pl.BlockSpec((bt, O), lambda b, c, ml: (b, 0)),
        scratch_shapes=[
            pltpu.VMEM((bt, H), jnp.float32),         # hidden state carry
            pltpu.VMEM((tc * bt, H), jnp.float32),    # hoisted gi_r
            pltpu.VMEM((tc * bt, H), jnp.float32),    # hoisted gi_z
            pltpu.VMEM((tc * bt, H), jnp.float32),    # hoisted gi_n
        ],
    )

    o = pl.pallas_call(
        kernel,
        out_shape=jax.ShapeDtypeStruct((b_pad, O), jnp.float32),
        grid_spec=grid_spec,
        compiler_params=pltpu.CompilerParams(
            dimension_semantics=("parallel", "arbitrary"),
            vmem_limit_bytes=32 * 1024 * 1024,
        ),
    )(max_len, *common_args, *head_args)

    return {"output": o[:B, 0]}   # drop batch padding, squeeze(-1)


# ---------------------------------------------------------------------------
# Pure-JAX reference (for verification)
# ---------------------------------------------------------------------------
def gru_reference(params, x, lens, demo=None):
    B, T, _ = x.shape
    H = HIDDEN_DIM
    wih_t = params["w_ih"].T
    whh_t = params["w_hh"].T
    h = jnp.zeros((B, H), jnp.float32)
    for t in range(T):
        gi = x[:, t, :] @ wih_t + params["b_ih"]
        gh = h @ whh_t + params["b_hh"]
        r = jax.nn.sigmoid(gi[:, :H] + gh[:, :H])
        z = jax.nn.sigmoid(gi[:, H:2 * H] + gh[:, H:2 * H])
        n = jnp.tanh(gi[:, 2 * H:] + r * gh[:, 2 * H:])
        h_new = (1.0 - z) * n + z * h
        h = jnp.where((t < lens)[:, None], h_new, h)
    if demo is not None:
        e = jnp.tanh(demo @ params["w_proj"].T + params["b_proj"])
        logits = jnp.concatenate([h, e], 1) @ params["w_demo_out"].T + params["b_demo_out"]
    else:
        logits = h @ params["w_out"].T + params["b_out"]
    return jax.nn.sigmoid(logits)[:, 0]


# ---------------------------------------------------------------------------
# Deterministic parameter init (PyTorch-style uniform bounds)
# ---------------------------------------------------------------------------
def init_params(key):
    ks = jax.random.split(key, 12)
    s_gru = 1.0 / jnp.sqrt(HIDDEN_DIM)
    s_out = 1.0 / jnp.sqrt(HIDDEN_DIM)
    s_dout = 1.0 / jnp.sqrt(2 * HIDDEN_DIM)
    s_proj = 1.0 / jnp.sqrt(DEMO_DIM)

    def u(k, shape, s):
        return jax.random.uniform(k, shape, jnp.float32, -s, s)

    return {
        "w_ih": u(ks[0], (3 * HIDDEN_DIM, INPUT_DIM), s_gru),
        "w_hh": u(ks[1], (3 * HIDDEN_DIM, HIDDEN_DIM), s_gru),
        "b_ih": u(ks[2], (3 * HIDDEN_DIM,), s_gru),
        "b_hh": u(ks[3], (3 * HIDDEN_DIM,), s_gru),
        "w_out": u(ks[4], (OUTPUT_DIM, HIDDEN_DIM), s_out),
        "b_out": u(ks[5], (OUTPUT_DIM,), s_out),
        "w_demo_out": u(ks[6], (OUTPUT_DIM, 2 * HIDDEN_DIM), s_dout),
        "b_demo_out": u(ks[7], (OUTPUT_DIM,), s_dout),
        "w_proj": u(ks[8], (HIDDEN_DIM, DEMO_DIM), s_proj),
        "b_proj": u(ks[9], (HIDDEN_DIM,), s_proj),
    }


if __name__ == "__main__":
    key = jax.random.PRNGKey(0)
    kp, kx, kd = jax.random.split(key, 3)

    B, T = 4, 8
    params = init_params(kp)
    x = jax.random.normal(kx, (B, T, INPUT_DIM), jnp.float32)
    demo = jax.random.normal(kd, (B, DEMO_DIM), jnp.float32)
    lens = jnp.array([8, 5, 3, 6], jnp.int32)

    # demo branch (single time chunk)
    out_demo = gru_forward(params, x, lens, demo)["output"]
    jax.block_until_ready(out_demo)
    ref_demo = gru_reference(params, x, lens, demo)

    # no-demo branch
    out_plain = gru_forward(params, x, lens, None)["output"]
    jax.block_until_ready(out_plain)
    ref_plain = gru_reference(params, x, lens, None)

    # demo branch again, forcing multiple time chunks to exercise the
    # chunked recurrence + VMEM hidden-state carry.
    out_chunked = gru_forward(params, x, lens, demo, t_chunk=4)["output"]
    jax.block_until_ready(out_chunked)

    assert out_demo.shape == (B,) and out_plain.shape == (B,)
    assert jnp.allclose(out_demo, ref_demo, atol=1e-4, rtol=1e-4)
    assert jnp.allclose(out_plain, ref_plain, atol=1e-4, rtol=1e-4)
    assert jnp.allclose(out_chunked, ref_demo, atol=1e-4, rtol=1e-4)

    print("KERNEL_OK")
</pallas_src>

<mosaic_0001>
module attributes {stable_mosaic.version = 11 : i64} {
  func.func @_gru_forward_kernel(%arg0: i32, %arg1: i32, %arg2: memref<1xi32, #tpu.memory_space<smem>>, %arg3: memref<8x1xi32, #tpu.memory_space<vmem>>, %arg4: memref<8x8x17xf32, #tpu.memory_space<vmem>>, %arg5: memref<17x192xf32, #tpu.memory_space<vmem>>, %arg6: memref<64x64xf32, #tpu.memory_space<vmem>>, %arg7: memref<64x64xf32, #tpu.memory_space<vmem>>, %arg8: memref<64x64xf32, #tpu.memory_space<vmem>>, %arg9: memref<1x192xf32, #tpu.memory_space<vmem>>, %arg10: memref<1x64xf32, #tpu.memory_space<vmem>>, %arg11: memref<4x64xf32, #tpu.memory_space<vmem>>, %arg12: memref<1x64xf32, #tpu.memory_space<vmem>>, %arg13: memref<64x1xf32, #tpu.memory_space<vmem>>, %arg14: memref<64x1xf32, #tpu.memory_space<vmem>>, %arg15: memref<1x1xf32, #tpu.memory_space<vmem>>, %arg16: memref<8x4xf32, #tpu.memory_space<vmem>>, %arg17: memref<8x1xf32, #tpu.memory_space<vmem>>, %arg18: memref<8x64xf32, #tpu.memory_space<vmem>>, %arg19: memref<64x64xf32, #tpu.memory_space<vmem>>, %arg20: memref<64x64xf32, #tpu.memory_space<vmem>>, %arg21: memref<64x64xf32, #tpu.memory_space<vmem>>) attributes {dimension_semantics = [#tpu.dimension_semantics<parallel>, #tpu.dimension_semantics<arbitrary>], iteration_bounds = array<i64: 1, 1>, scalar_prefetch = 1 : i64, scratch_operands = 4 : i64, tpu.core_type = #tpu.core_type<tc>, window_params = [{transform_indices = @transform_0, window_bounds = array<i64: 8, 1>}, {transform_indices = @transform_1, window_bounds = array<i64: 8, 8, 17>}, {pipeline_mode = #tpu.pipeline_mode<synchronous>, transform_indices = @transform_2, window_bounds = array<i64: 17, 192>}, {pipeline_mode = #tpu.pipeline_mode<synchronous>, transform_indices = @transform_3, window_bounds = array<i64: 64, 64>}, {pipeline_mode = #tpu.pipeline_mode<synchronous>, transform_indices = @transform_4, window_bounds = array<i64: 64, 64>}, {pipeline_mode = #tpu.pipeline_mode<synchronous>, transform_indices = @transform_5, window_bounds = array<i64: 64, 64>}, {pipeline_mode = #tpu.pipeline_mode<synchronous>, transform_indices = @transform_6, window_bounds = array<i64: 1, 192>}, {pipeline_mode = #tpu.pipeline_mode<synchronous>, transform_indices = @transform_7, window_bounds = array<i64: 1, 64>}, {pipeline_mode = #tpu.pipeline_mode<synchronous>, transform_indices = @transform_8, window_bounds = array<i64: 4, 64>}, {pipeline_mode = #tpu.pipeline_mode<synchronous>, transform_indices = @transform_9, window_bounds = array<i64: 1, 64>}, {pipeline_mode = #tpu.pipeline_mode<synchronous>, transform_indices = @transform_10, window_bounds = array<i64: 64, 1>}, {pipeline_mode = #tpu.pipeline_mode<synchronous>, transform_indices = @transform_11, window_bounds = array<i64: 64, 1>}, {pipeline_mode = #tpu.pipeline_mode<synchronous>, transform_indices = @transform_12, window_bounds = array<i64: 1, 1>}, {transform_indices = @transform_13, window_bounds = array<i64: 8, 4>}, {transform_indices = @transform_14, window_bounds = array<i64: 8, 1>}]} {
    %c0 = arith.constant 0 : index
    %0 = memref.load %arg2[%c0] : memref<1xi32, #tpu.memory_space<smem>>
    %c8_i32 = arith.constant 8 : i32
    %1 = arith.muli %arg1, %c8_i32 : i32
    %c0_i32 = arith.constant 0 : i32
    %2 = arith.cmpi eq, %arg1, %c0_i32 : i32
    %3 = arith.extui %2 : i1 to i32
    %c0_i32_0 = arith.constant 0 : i32
    %4 = arith.cmpi ne, %3, %c0_i32_0 : i32
    scf.if %4 {
      %cst = arith.constant 0.000000e+00 : f32
      %11 = vector.broadcast %cst : f32 to vector<8x64xf32>
      %c0_4 = arith.constant 0 : index
      %c0_5 = arith.constant 0 : index
      %12 = vector.load %arg18[%c0_4, %c0_5] : memref<8x64xf32, #tpu.memory_space<vmem>>, vector<8x64xf32>
      tpu.vector_store %arg18[%c0_4, %c0_5], %11 {strides = array<i32>} : memref<8x64xf32, #tpu.memory_space<vmem>>, vector<8x64xf32>,
    } else {
    }
    %5 = arith.cmpi slt, %1, %0 : i32
    %6 = arith.extui %5 : i1 to i32
    %c0_i32_1 = arith.constant 0 : i32
    %7 = arith.cmpi ne, %6, %c0_i32_1 : i32
    scf.if %7 {
      %c0_4 = arith.constant 0 : index
      %c0_5 = arith.constant 0 : index
      %c0_6 = arith.constant 0 : index
      %11 = vector.load %arg4[%c0_4, %c0_5, %c0_6] : memref<8x8x17xf32, #tpu.memory_space<vmem>>, vector<8x8x17xf32>
      %12 = vector.shape_cast %11 : vector<8x8x17xf32> to vector<64x17xf32>
      %c0_7 = arith.constant 0 : index
      %c0_8 = arith.constant 0 : index
      %13 = vector.load %arg5[%c0_7, %c0_8] : memref<17x192xf32, #tpu.memory_space<vmem>>, vector<17x192xf32>
      %cst = arith.constant dense<0.000000e+00> : vector<64x192xf32>
      %14 = tpu.matmul %12, %13, %cst {dimension_numbers = #tpu.dot_dimension_numbers<[1], [0], [0], [1], [0, 0, 1, 1], [], []>} : vector<64x17xf32>, vector<17x192xf32>, vector<64x192xf32> -> vector<64x192xf32>
      %c0_9 = arith.constant 0 : index
      %c0_10 = arith.constant 0 : index
      %15 = vector.load %arg9[%c0_9, %c0_10] : memref<1x192xf32, #tpu.memory_space<vmem>>, vector<1x192xf32>
      %16 = vector.broadcast %15 : vector<1x192xf32> to vector<64x192xf32>
      %17 = arith.addf %14, %16 : vector<64x192xf32>
      %18 = vector.extract_strided_slice %17 {offsets = [0, 0], sizes = [64, 64], strides = [1, 1]} : vector<64x192xf32> to vector<64x64xf32>
      %c0_11 = arith.constant 0 : index
      %c0_12 = arith.constant 0 : index
      %19 = vector.load %arg19[%c0_11, %c0_12] : memref<64x64xf32, #tpu.memory_space<vmem>>, vector<64x64xf32>
      tpu.vector_store %arg19[%c0_11, %c0_12], %18 {strides = array<i32>} : memref<64x64xf32, #tpu.memory_space<vmem>>, vector<64x64xf32>,
      %20 = vector.extract_strided_slice %17 {offsets = [0, 64], sizes = [64, 64], strides = [1, 1]} : vector<64x192xf32> to vector<64x64xf32>
      %c0_13 = arith.constant 0 : index
      %c0_14 = arith.constant 0 : index
      %21 = vector.load %arg20[%c0_13, %c0_14] : memref<64x64xf32, #tpu.memory_space<vmem>>, vector<64x64xf32>
      tpu.vector_store %arg20[%c0_13, %c0_14], %20 {strides = array<i32>} : memref<64x64xf32, #tpu.memory_space<vmem>>, vector<64x64xf32>,
      %22 = vector.extract_strided_slice %17 {offsets = [0, 128], sizes = [64, 64], strides = [1, 1]} : vector<64x192xf32> to vector<64x64xf32>
      %c0_15 = arith.constant 0 : index
      %c0_16 = arith.constant 0 : index
      %23 = vector.load %arg21[%c0_15, %c0_16] : memref<64x64xf32, #tpu.memory_space<vmem>>, vector<64x64xf32>
      tpu.vector_store %arg21[%c0_15, %c0_16], %22 {strides = array<i32>} : memref<64x64xf32, #tpu.memory_space<vmem>>, vector<64x64xf32>,
      %c0_17 = arith.constant 0 : index
      %c0_18 = arith.constant 0 : index
      %24 = vector.load %arg6[%c0_17, %c0_18] : memref<64x64xf32, #tpu.memory_space<vmem>>, vector<64x64xf32>
      %c0_19 = arith.constant 0 : index
      %c0_20 = arith.constant 0 : index
      %25 = vector.load %arg7[%c0_19, %c0_20] : memref<64x64xf32, #tpu.memory_space<vmem>>, vector<64x64xf32>
      %c0_21 = arith.constant 0 : index
      %c0_22 = arith.constant 0 : index
      %26 = vector.load %arg8[%c0_21, %c0_22] : memref<64x64xf32, #tpu.memory_space<vmem>>, vector<64x64xf32>
      %c0_23 = arith.constant 0 : index
      %c0_24 = arith.constant 0 : index
      %27 = vector.load %arg10[%c0_23, %c0_24] : memref<1x64xf32, #tpu.memory_space<vmem>>, vector<1x64xf32>
      %28 = vector.shape_cast %27 : vector<1x64xf32> to vector<1x64xf32>
      %29 = vector.broadcast %28 : vector<1x64xf32> to vector<8x64xf32>
      %c0_25 = arith.constant 0 : index
      %c0_26 = arith.constant 0 : index
      %30 = vector.load %arg3[%c0_25, %c0_26] : memref<8x1xi32, #tpu.memory_space<vmem>>, vector<8x1xi32>
      %31 = arith.subi %0, %1 : i32
      %c8_i32_27 = arith.constant 8 : i32
      %32 = arith.minsi %31, %c8_i32_27 : i32
      %c0_i32_28 = arith.constant 0 : i32
      %33 = arith.subi %32, %c0_i32_28 : i32
      %c1_i32 = arith.constant 1 : i32
      %c1_i32_29 = arith.constant 1 : i32
      %34 = arith.subi %c1_i32, %c1_i32_29 : i32
      %35 = arith.addi %33, %34 : i32
      %c1_i32_30 = arith.constant 1 : i32
      %36 = arith.divsi %35, %c1_i32_30 : i32
      %c1_i32_31 = arith.constant 1 : i32
      %c0_i32_32 = arith.constant 0 : i32
      %c0_i32_33 = arith.constant 0 : i32
      %37 = arith.subi %36, %c0_i32_33 : i32
      %38 = arith.addi %c0_i32_33, %37 : i32
      %c1_i32_34 = arith.constant 1 : i32
      scf.for %arg22 = %c0_i32_33 to %38 step %c1_i32_34  : i32 {
        %39 = arith.muli %arg22, %c1_i32_31 : i32
        %40 = arith.addi %c0_i32_32, %39 : i32
        %c8_i32_35 = arith.constant 8 : i32
        %41 = arith.muli %40, %c8_i32_35 : i32
        %42 = tpu.assume_multiple %41, 8 : i32
        %c0_36 = arith.constant 0 : index
        %c0_37 = arith.constant 0 : index
        %43 = vector.load %arg18[%c0_36, %c0_37] : memref<8x64xf32, #tpu.memory_space<vmem>>, vector<8x64xf32>
        %cst_38 = arith.constant dense<0.000000e+00> : vector<8x64xf32>
        %44 = tpu.matmul %43, %24, %cst_38 {dimension_numbers = #tpu.dot_dimension_numbers<[1], [0], [0], [1], [0, 0, 1, 1], [], []>} : vector<8x64xf32>, vector<64x64xf32>, vector<8x64xf32> -> vector<8x64xf32>
        %cst_39 = arith.constant dense<0.000000e+00> : vector<8x64xf32>
        %45 = tpu.matmul %43, %25, %cst_39 {dimension_numbers = #tpu.dot_dimension_numbers<[1], [0], [0], [1], [0, 0, 1, 1], [], []>} : vector<8x64xf32>, vector<64x64xf32>, vector<8x64xf32> -> vector<8x64xf32>
        %cst_40 = arith.constant dense<0.000000e+00> : vector<8x64xf32>
        %46 = tpu.matmul %43, %26, %cst_40 {dimension_numbers = #tpu.dot_dimension_numbers<[1], [0], [0], [1], [0, 0, 1, 1], [], []>} : vector<8x64xf32>, vector<64x64xf32>, vector<8x64xf32> -> vector<8x64xf32>
        %47 = arith.index_cast %42 : i32 to index
        %c0_41 = arith.constant 0 : index
        %48 = vector.load %arg19[%47, %c0_41] : memref<64x64xf32, #tpu.memory_space<vmem>>, vector<8x64xf32>
        %49 = arith.addf %48, %44 : vector<8x64xf32>
        %50 = arith.negf %49 : vector<8x64xf32>
        %51 = math.exp %50 : vector<8x64xf32>
        %cst_42 = arith.constant 1.000000e+00 : f32
        %52 = vector.broadcast %cst_42 : f32 to vector<8x64xf32>
        %53 = arith.addf %52, %51 : vector<8x64xf32>
        %54 = arith.divf %52, %53 : vector<8x64xf32>
        %55 = arith.index_cast %42 : i32 to index
        %c0_43 = arith.constant 0 : index
        %56 = vector.load %arg20[%55, %c0_43] : memref<64x64xf32, #tpu.memory_space<vmem>>, vector<8x64xf32>
        %57 = arith.addf %56, %45 : vector<8x64xf32>
        %58 = arith.negf %57 : vector<8x64xf32>
        %59 = math.exp %58 : vector<8x64xf32>
        %cst_44 = arith.constant 1.000000e+00 : f32
        %60 = vector.broadcast %cst_44 : f32 to vector<8x64xf32>
        %61 = arith.addf %60, %59 : vector<8x64xf32>
        %62 = arith.divf %60, %61 : vector<8x64xf32>
        %63 = arith.index_cast %42 : i32 to index
        %c0_45 = arith.constant 0 : index
        %64 = vector.load %arg21[%63, %c0_45] : memref<64x64xf32, #tpu.memory_space<vmem>>, vector<8x64xf32>
        %65 = arith.addf %46, %29 : vector<8x64xf32>
        %66 = arith.mulf %54, %65 : vector<8x64xf32>
        %67 = arith.addf %64, %66 : vector<8x64xf32>
        %68 = math.tanh %67 : vector<8x64xf32>
        %cst_46 = arith.constant 1.000000e+00 : f32
        %69 = vector.broadcast %cst_46 : f32 to vector<8x64xf32>
        %70 = arith.subf %69, %62 : vector<8x64xf32>
        %71 = arith.mulf %70, %68 : vector<8x64xf32>
        %72 = arith.mulf %62, %43 : vector<8x64xf32>
        %73 = arith.addf %71, %72 : vector<8x64xf32>
        %74 = arith.addi %1, %40 : i32
        %75 = vector.broadcast %74 : i32 to vector<8x1xi32>
        %76 = arith.cmpi slt, %75, %30 : vector<8x1xi32>
        %77 = vector.shape_cast %76 : vector<8x1xi1> to vector<8x1xi1>
        %78 = vector.broadcast %77 : vector<8x1xi1> to vector<8x64xi1>
        %79 = arith.select %78, %73, %43 : vector<8x64xi1>, vector<8x64xf32>
        %c0_47 = arith.constant 0 : index
        %c0_48 = arith.constant 0 : index
        %80 = vector.load %arg18[%c0_47, %c0_48] : memref<8x64xf32, #tpu.memory_space<vmem>>, vector<8x64xf32>
        tpu.vector_store %arg18[%c0_47, %c0_48], %79 {strides = array<i32>} : memref<8x64xf32, #tpu.memory_space<vmem>>, vector<8x64xf32>,
      }
    } else {
    }
    %c0_i32_2 = arith.constant 0 : i32
    %8 = arith.cmpi eq, %arg1, %c0_i32_2 : i32
    %9 = arith.extui %8 : i1 to i32
    %c0_i32_3 = arith.constant 0 : i32
    %10 = arith.cmpi ne, %9, %c0_i32_3 : i32
    scf.if %10 {
      %c0_4 = arith.constant 0 : index
      %c0_5 = arith.constant 0 : index
      %11 = vector.load %arg18[%c0_4, %c0_5] : memref<8x64xf32, #tpu.memory_space<vmem>>, vector<8x64xf32>
      %c0_6 = arith.constant 0 : index
      %c0_7 = arith.constant 0 : index
      %12 = vector.load %arg16[%c0_6, %c0_7] : memref<8x4xf32, #tpu.memory_space<vmem>>, vector<8x4xf32>
      %c0_8 = arith.constant 0 : index
      %c0_9 = arith.constant 0 : index
      %13 = vector.load %arg11[%c0_8, %c0_9] : memref<4x64xf32, #tpu.memory_space<vmem>>, vector<4x64xf32>
      %cst = arith.constant dense<0.000000e+00> : vector<8x64xf32>
      %14 = tpu.matmul %12, %13, %cst {dimension_numbers = #tpu.dot_dimension_numbers<[1], [0], [0], [1], [0, 0, 1, 1], [], []>} : vector<8x4xf32>, vector<4x64xf32>, vector<8x64xf32> -> vector<8x64xf32>
      %c0_10 = arith.constant 0 : index
      %c0_11 = arith.constant 0 : index
      %15 = vector.load %arg12[%c0_10, %c0_11] : memref<1x64xf32, #tpu.memory_space<vmem>>, vector<1x64xf32>
      %16 = vector.broadcast %15 : vector<1x64xf32> to vector<8x64xf32>
      %17 = arith.addf %14, %16 : vector<8x64xf32>
      %18 = math.tanh %17 : vector<8x64xf32>
      %c0_12 = arith.constant 0 : index
      %c0_13 = arith.constant 0 : index
      %19 = vector.load %arg13[%c0_12, %c0_13] : memref<64x1xf32, #tpu.memory_space<vmem>>, vector<64x1xf32>
      %cst_14 = arith.constant dense<0.000000e+00> : vector<8x1xf32>
      %20 = tpu.matmul %11, %19, %cst_14 {dimension_numbers = #tpu.dot_dimension_numbers<[1], [0], [0], [1], [0, 0, 1, 1], [], []>} : vector<8x64xf32>, vector<64x1xf32>, vector<8x1xf32> -> vector<8x1xf32>
      %c0_15 = arith.constant 0 : index
      %c0_16 = arith.constant 0 : index
      %21 = vector.load %arg14[%c0_15, %c0_16] : memref<64x1xf32, #tpu.memory_space<vmem>>, vector<64x1xf32>
      %cst_17 = arith.constant dense<0.000000e+00> : vector<8x1xf32>
      %22 = tpu.matmul %18, %21, %cst_17 {dimension_numbers = #tpu.dot_dimension_numbers<[1], [0], [0], [1], [0, 0, 1, 1], [], []>} : vector<8x64xf32>, vector<64x1xf32>, vector<8x1xf32> -> vector<8x1xf32>
      %23 = arith.addf %20, %22 : vector<8x1xf32>
      %c0_18 = arith.constant 0 : index
      %c0_19 = arith.constant 0 : index
      %24 = vector.load %arg15[%c0_18, %c0_19] : memref<1x1xf32, #tpu.memory_space<vmem>>, vector<1x1xf32>
      %25 = vector.broadcast %24 : vector<1x1xf32> to vector<8x1xf32>
      %26 = arith.addf %23, %25 : vector<8x1xf32>
      %27 = arith.negf %26 : vector<8x1xf32>
      %28 = math.exp %27 : vector<8x1xf32>
      %cst_20 = arith.constant 1.000000e+00 : f32
      %29 = vector.broadcast %cst_20 : f32 to vector<8x1xf32>
      %30 = arith.addf %29, %28 : vector<8x1xf32>
      %31 = arith.divf %29, %30 : vector<8x1xf32>
      %c0_21 = arith.constant 0 : index
      %c0_22 = arith.constant 0 : index
      %32 = vector.load %arg17[%c0_21, %c0_22] : memref<8x1xf32, #tpu.memory_space<vmem>>, vector<8x1xf32>
      tpu.vector_store %arg17[%c0_21, %c0_22], %31 {strides = array<i32>} : memref<8x1xf32, #tpu.memory_space<vmem>>, vector<8x1xf32>,
    } else {
    }
    return
  }
  func.func @transform_0(%arg0: i32, %arg1: i32, %arg2: memref<1xi32, #tpu.memory_space<smem>>) -> (i32, i32) {
    %c0_i32 = arith.constant 0 : i32
    %c0_i32_0 = arith.constant 0 : i32
    return %arg0, %c0_i32 : i32, i32
  }
  func.func @transform_1(%arg0: i32, %arg1: i32, %arg2: memref<1xi32, #tpu.memory_space<smem>>) -> (i32, i32, i32) {
    %c0_i32 = arith.constant 0 : i32
    %c0_i32_0 = arith.constant 0 : i32
    return %arg1, %arg0, %c0_i32 : i32, i32, i32
  }
  func.func @transform_2(%arg0: i32, %arg1: i32, %arg2: memref<1xi32, #tpu.memory_space<smem>>) -> (i32, i32) {
    %c0_i32 = arith.constant 0 : i32
    %c0_i32_0 = arith.constant 0 : i32
    %c0_i32_1 = arith.constant 0 : i32
    return %c0_i32, %c0_i32_0 : i32, i32
  }
  func.func @transform_3(%arg0: i32, %arg1: i32, %arg2: memref<1xi32, #tpu.memory_space<smem>>) -> (i32, i32) {
    %c0_i32 = arith.constant 0 : i32
    %c0_i32_0 = arith.constant 0 : i32
    %c0_i32_1 = arith.constant 0 : i32
    return %c0_i32, %c0_i32_0 : i32, i32
  }
  func.func @transform_4(%arg0: i32, %arg1: i32, %arg2: memref<1xi32, #tpu.memory_space<smem>>) -> (i32, i32) {
    %c0_i32 = arith.constant 0 : i32
    %c0_i32_0 = arith.constant 0 : i32
    %c0_i32_1 = arith.constant 0 : i32
    return %c0_i32, %c0_i32_0 : i32, i32
  }
  func.func @transform_5(%arg0: i32, %arg1: i32, %arg2: memref<1xi32, #tpu.memory_space<smem>>) -> (i32, i32) {
    %c0_i32 = arith.constant 0 : i32
    %c0_i32_0 = arith.constant 0 : i32
    %c0_i32_1 = arith.constant 0 : i32
    return %c0_i32, %c0_i32_0 : i32, i32
  }
  func.func @transform_6(%arg0: i32, %arg1: i32, %arg2: memref<1xi32, #tpu.memory_space<smem>>) -> (i32, i32) {
    %c0_i32 = arith.constant 0 : i32
    %c0_i32_0 = arith.constant 0 : i32
    %c0_i32_1 = arith.constant 0 : i32
    return %c0_i32, %c0_i32_0 : i32, i32
  }
  func.func @transform_7(%arg0: i32, %arg1: i32, %arg2: memref<1xi32, #tpu.memory_space<smem>>) -> (i32, i32) {
    %c0_i32 = arith.constant 0 : i32
    %c0_i32_0 = arith.constant 0 : i32
    %c0_i32_1 = arith.constant 0 : i32
    return %c0_i32, %c0_i32_0 : i32, i32
  }
  func.func @transform_8(%arg0: i32, %arg1: i32, %arg2: memref<1xi32, #tpu.memory_space<smem>>) -> (i32, i32) {
    %c0_i32 = arith.constant 0 : i32
    %c0_i32_0 = arith.constant 0 : i32
    %c0_i32_1 = arith.constant 0 : i32
    return %c0_i32, %c0_i32_0 : i32, i32
  }
  func.func @transform_9(%arg0: i32, %arg1: i32, %arg2: memref<1xi32, #tpu.memory_space<smem>>) -> (i32, i32) {
    %c0_i32 = arith.constant 0 : i32
    %c0_i32_0 = arith.constant 0 : i32
    %c0_i32_1 = arith.constant 0 : i32
    return %c0_i32, %c0_i32_0 : i32, i32
  }
  func.func @transform_10(%arg0: i32, %arg1: i32, %arg2: memref<1xi32, #tpu.memory_space<smem>>) -> (i32, i32) {
    %c0_i32 = arith.constant 0 : i32
    %c0_i32_0 = arith.constant 0 : i32
    %c0_i32_1 = arith.constant 0 : i32
    return %c0_i32, %c0_i32_0 : i32, i32
  }
  func.func @transform_11(%arg0: i32, %arg1: i32, %arg2: memref<1xi32, #tpu.memory_space<smem>>) -> (i32, i32) {
    %c0_i32 = arith.constant 0 : i32
    %c0_i32_0 = arith.constant 0 : i32
    %c0_i32_1 = arith.constant 0 : i32
    return %c0_i32, %c0_i32_0 : i32, i32
  }
  func.func @transform_12(%arg0: i32, %arg1: i32, %arg2: memref<1xi32, #tpu.memory_space<smem>>) -> (i32, i32) {
    %c0_i32 = arith.constant 0 : i32
    %c0_i32_0 = arith.constant 0 : i32
    %c0_i32_1 = arith.constant 0 : i32
    return %c0_i32, %c0_i32_0 : i32, i32
  }
  func.func @transform_13(%arg0: i32, %arg1: i32, %arg2: memref<1xi32, #tpu.memory_space<smem>>) -> (i32, i32) {
    %c0_i32 = arith.constant 0 : i32
    %c0_i32_0 = arith.constant 0 : i32
    return %arg0, %c0_i32 : i32, i32
  }
  func.func @transform_14(%arg0: i32, %arg1: i32, %arg2: memref<1xi32, #tpu.memory_space<smem>>) -> (i32, i32) {
    %c0_i32 = arith.constant 0 : i32
    %c0_i32_0 = arith.constant 0 : i32
    return %arg0, %c0_i32 : i32, i32
  }
}

</mosaic_0001>

<bundles_post_ra>
// kernel: tpu_custom_call.1
= control target key start
LH: loop header
LB: loop body
LE: loop exit
PB: predicated region body
PF: predicated region fallthrough
CT: control target
= control target key end

     0   :  { %s1718_s0 = inlined_call_operand.<no memory space> [shape: s32[1], index: 0, kind: input, shape index: {}]   ;;  %s1719_s1 = inlined_call_operand.vmem [shape: s32[8,1], index: 1, kind: input, shape index: {}]   ;;  %s1720_s2 = inlined_call_operand.vmem [shape: f32[8,8,17], index: 2, kind: input, shape index: {}]   ;;  %s1721_s3 = inlined_call_operand.hbm [shape: f32[17,192], index: 3, kind: input, shape index: {}]   ;;  %s1722_s4 = inlined_call_operand.vmem [shape: f32[64,64], index: 4, kind: input, shape index: {}]   ;;  %s1723_s5 = inlined_call_operand.hbm [shape: f32[64,64], index: 5, kind: input, shape index: {}]   ;;  %s1724_s6 = inlined_call_operand.hbm [shape: f32[64,64], index: 6, kind: input, shape index: {}]   ;;  %s1725_s7 = inlined_call_operand.vmem [shape: f32[1,192], index: 7, kind: input, shape index: {}]   ;;  %s1726_s8 = inlined_call_operand.vmem [shape: f32[1,64], index: 8, kind: input, shape index: {}]   ;;  %s1727_s9 = inlined_call_operand.vmem [shape: f32[4,64], index: 9, kind: input, shape index: {}]   ;;  %s1728_s10 = inlined_call_operand.vmem [shape: f32[1,64], index: 10, kind: input, shape index: {}]   ;;  %s1729_s11 = inlined_call_operand.vmem [shape: f32[64,1], index: 11, kind: input, shape index: {}]   ;;  %s1730_s12 = inlined_call_operand.vmem [shape: f32[64,1], index: 12, kind: input, shape index: {}]   ;;  %s1731_s13 = inlined_call_operand.<no memory space> [shape: f32[1,1], index: 13, kind: input, shape index: {}]   ;;  %s1732_s14 = inlined_call_operand.vmem [shape: f32[8,4], index: 14, kind: input, shape index: {}]   ;;  %s1733_s15 = inlined_call_operand.vmem [shape: f32[8,1], index: 15, kind: output, shape index: {}]  }
   0x1   :  { %v21_v0 = vstv %s1731_s13 }
   0x2   :  { %22 = vst [vmem:[#allocation8] sm:$0x1] %v21_v0 }
   0x3   :  { %23 = vsyncpa [#allocation10], 0 }
   0x4   :  { %24 = vsyncpa [#allocation12], 0  ;;  %s1277_s20 = smov [#allocation11]   ;;  %s1199_s24 = scalar_lea.hbm %s1723_s5, 1024 }
   0x5   :  { %s48_s21 = sshll.u32 %s1277_s20, 4  ;;  %p1200_p0 = scmp.ne.s32.totalorder %s1723_s5, %s1199_s24  ;;  %s49_s21 = int_to_ptr.vmem [resolvable:$true] %s48_s21 }
   0x6   :  { %p1203_p1 = scmp.lt.u32.totalorder %s1199_s24, %s1723_s5 }
   0x8   :  { %p1205_p2 = pnand %p1203_p1, %p1200_p0 }
   0xa   :  { %1208 = shalt.err (!%p1205_p2)
}
   0xb   :  { %s1209_s13 = scalar_lea.vmem %s49_s21, 1024  ;;  %p1214_p4 = scmp.lt.s32.totalorder %s49_s21, %s49_s21 }
   0xc   :  { %p1210_p3 = scmp.ne.s32.totalorder %s49_s21, %s1209_s13  ;;  %p1215_p5 = scmp.lt.s32.totalorder %s1209_s13, %s1209_s13 }
   0xe   :  { %p1216_p6 = por %p1215_p5, %p1214_p4 }
  0x10   :  { %p1217_p7 = pnand %p1216_p6, %p1210_p3 }
  0x12   :  { %1220 = shalt.err (!%p1217_p7)
}
  0x13   :  { %s1278_s29 = smov 128   ;;  %s1279_s30 = smov 8  }
  0x14   :  { %54 = dma.hbm_to_vmem [thread:$0]  %s1723_s5, 1024, %s49_s21, [#allocation12], %s1278_s29, %s1278_s29, %s1279_s30  }
  0x15   :  { %s1280_s18 = smov [#allocation9]   ;;  %s1221_s23 = scalar_lea.hbm %s1721_s3, 768 }
  0x16   :  { %s34_s19 = sshll.u32 %s1280_s18, 4  ;;  %p1222_p8 = scmp.ne.s32.totalorder %s1721_s3, %s1221_s23  ;;  %s35_s19 = int_to_ptr.vmem [resolvable:$true] %s34_s19 }
  0x17   :  { %p1225_p9 = scmp.lt.u32.totalorder %s1221_s23, %s1721_s3 }
  0x19   :  { %p1227_p10 = pnand %p1225_p9, %p1222_p8 }
  0x1b   :  { %1230 = shalt.err (!%p1227_p10)
}
  0x1c   :  { %s1231_s28 = scalar_lea.vmem %s35_s19, 768  ;;  %p1236_p12 = scmp.lt.s32.totalorder %s35_s19, %s35_s19 }
  0x1d   :  { %p1232_p11 = scmp.ne.s32.totalorder %s35_s19, %s1231_s28  ;;  %p1237_p13 = scmp.lt.s32.totalorder %s1231_s28, %s1231_s28 }
  0x1f   :  { %p1238_p0 = por %p1237_p13, %p1236_p12 }
  0x21   :  { %p1239_p1 = pnand %p1238_p0, %p1232_p11 }
  0x23   :  { %1242 = shalt.err (!%p1239_p1)
}
  0x24   :  { %s1281_s5 = smov 256   ;;  %s1282_s21 = smov 16  }
  0x25   :  { %40 = dma.hbm_to_vmem [thread:$0]  %s1721_s3, 768, %s35_s19, [#allocation10], %s1281_s5, %s1281_s5, %s1282_s21  }
  0x26   :  { %s1283_s17 = smov [#allocation13]   ;;  %s1243_s23 = scalar_lea.hbm %s1724_s6, 1024 }
  0x27   :  { %s60_s18 = sshll.u32 %s1283_s17, 4  ;;  %p1244_p2 = scmp.ne.s32.totalorder %s1724_s6, %s1243_s23  ;;  %s61_s18 = int_to_ptr.vmem [resolvable:$true] %s60_s18 }
  0x28   :  { %p1247_p3 = scmp.lt.u32.totalorder %s1243_s23, %s1724_s6 }
  0x2a   :  { %p1249_p4 = pnand %p1247_p3, %p1244_p2 }
  0x2c   :  { %1252 = shalt.err (!%p1249_p4)
}
  0x2d   :  { %s1253_s28 = scalar_lea.vmem %s61_s18, 1024  ;;  %p1258_p6 = scmp.lt.s32.totalorder %s61_s18, %s61_s18 }
  0x2e   :  { %p1254_p5 = scmp.ne.s32.totalorder %s61_s18, %s1253_s28  ;;  %p1259_p7 = scmp.lt.s32.totalorder %s1253_s28, %s1253_s28 }
  0x30   :  { %p1260_p8 = por %p1259_p7, %p1258_p6 }
  0x32   :  { %p1261_p9 = pnand %p1260_p8, %p1254_p5 }
  0x34   :  { %1264 = shalt.err (!%p1261_p9)
}
  0x35   :  { %66 = dma.hbm_to_vmem [thread:$0]  %s1724_s6, 1024, %s61_s18, [#allocation12], %s1278_s29, %s1278_s29, %s1279_s30  }
  0x36   :  { %1269 = dma.done.wait [#allocation10], 768  }
  0x37   :  { %1270 = vsyncadd [#allocation10], 4294966528 }
  0x38   :  { %1271 = dma.done.wait [#allocation12], 2048  }
  0x39   :  { %1272 = vsyncadd [#allocation12], 4294965248  ;;  %vm98_vm0 = vcmask 523264   ;;  %v1284_v1 = vmov 0.0   ;;  %p914_p10 = scmp.le.s32.totalorder %s1718_s0, 0 }
  0x3a   :  { %99 = vst.msk [vmem:[#allocation2] sm:$0xff] %vm98_vm0, %v1284_v1  ;;  %v113_v2 = vld [vmem:[#allocation9 + $0x8] sm:$0xff] (!%p914_p10)  ;;  %v115_v3 = vld [vmem:[#allocation9 + $0x18] sm:$0xff] (!%p914_p10)  ;;  %v112_v4 = vld [vmem:[#allocation9] sm:$0xff] (!%p914_p10)  ;;  %v1285_v7 = vmov (!%p914_p10), 0.0   ;;  %vm155_vm1 = vcmask (!%p914_p10), 1040384   ;;  %v120_v19 = vlaneseq (!%p914_p10) }
  0x3b   :  { %103 = sbr.rel (%p914_p10) target bundleno = 691 (0x2b3), region = 77  ;;  %v1090_v5 = vpack.c.bf16 (!%p914_p10), %v115_v3, %v113_v2  ;;  %v114_v6 = vld [vmem:[#allocation9 + $0x10] sm:$0xff] (!%p914_p10)  ;;  %226 = vmatprep.mubr.f32.mxu0 (!%p914_p10), %v1285_v7  ;;  %250 = vmatprep.mubr.f32.mxu1 (!%p914_p10), %v1285_v7  ;;  %v117_v9 = vld [vmem:[#allocation9 + $0x28] sm:$0x1] (!%p914_p10)  ;;  %v116_v10 = vld [vmem:[#allocation9 + $0x20] sm:$0x1] (!%p914_p10) }
  0x3c   :  { %v1092_v8 = vpack.c.bf16 (!%p914_p10), %v114_v6, %v112_v4  ;;  %v104_v11 = vld [vmem:[%s1720_s2] sm:$0xff] (!%p914_p10)  ;;  %vm130_vm2 = vcmask (!%p914_p10), 138240   ;;  %v105_v13 = vld [vmem:[%s1720_s2 + $0x8] sm:$0xff] (!%p914_p10)  ;;  %v106_v15 = vld [vmem:[%s1720_s2 + $0x10] sm:$0xff] (!%p914_p10)  ;;  %v121_v20 = vshrl.u32 (!%p914_p10), %v120_v19, 7  ;;  %p365_p11 = scmp.lt.s32.totalorder (!%p914_p10), %s1718_s0, 8 }
  0x3d   :  { %1091 = vmatprep.subr.bf16.mxu0 (!%p914_p10), %v1090_v5  ;;  %1154 = vmatprep.subr.bf16.mxu1 (!%p914_p10), %v1090_v5  ;;  %v108_v12 = vld [vmem:[%s1720_s2 + $0x20] sm:$0xff] (!%p914_p10)  ;;  %v109_v14 = vld [vmem:[%s1720_s2 + $0x28] sm:$0xff] (!%p914_p10)  ;;  %v110_v16 = vld [vmem:[%s1720_s2 + $0x30] sm:$0xff] (!%p914_p10) }
  0x3e   :  { %1093 = vmatpush1.bf16.msra.mxu0 (!%p914_p10), %v1092_v8  ;;  %1156 = vmatpush1.bf16.msra.mxu1 (!%p914_p10), %v1092_v8  ;;  %v107_v17 = vld [vmem:[%s1720_s2 + $0x18] sm:$0xff] (!%p914_p10)  ;;  %v122_v21 = vsub.s32 (!%p914_p10), 0, %v121_v20  ;;  %v118_v22 = vld [vmem:[%s1725_s7] sm:$0x3] (!%p914_p10)  ;;  %v126_v23 = vsub.s32 (!%p914_p10), 1, %v121_v20  ;;  %v1490_v43 = vld [vmem:[%s1722_s4 + $0x8] sm:$0xff] (!%p914_p10) }
  0x3f   :  { %915 = vmatprep.subr.msk.mxu0 (!%p914_p10), %vm155_vm1, %v117_v9  ;;  %1155 = vmatprep.subr.msk.mxu1 (!%p914_p10), %vm155_vm1, %v117_v9  ;;  %v111_v18 = vld [vmem:[%s1720_s2 + $0x38] sm:$0xff] (!%p914_p10)  ;;  %s1286_s2 = smov (!%p914_p10), 64   ;;  %v1485_v42 = vld [vmem:[%s1722_s4] sm:$0xff] (!%p914_p10)  ;;  %v1495_v44 = vld [vmem:[%s1722_s4 + $0x10] sm:$0xff] (!%p914_p10) }
  0x40   :  { %v1462_v24 = vrot.slane (!%p914_p10), %v118_v22, %v122_v21  ;;  %v1464_v25 = vrot.slane (!%p914_p10), %v118_v22, %v126_v23  ;;  %v1509_v45 = vld [vmem:[%s1722_s4 + $0x18] sm:$0xff] (!%p914_p10)  ;;  %v1514_v46 = vld [vmem:[%s1722_s4 + $0x20] sm:$0xff] (!%p914_p10)  ;;  %v1523_v50 = vld [vmem:[%s1722_s4 + $0x28] sm:$0xff] (!%p914_p10) }
  0x41   :  { %v1516_v47 = vld [vmem:[#allocation11] sm:$0xff] (!%p914_p10)  ;;  %v1528_v51 = vld [vmem:[%s1722_s4 + $0x30] sm:$0xff] (!%p914_p10)  ;;  %v1537_v57 = vld [vmem:[#allocation11 + $0x8] sm:$0xff] (!%p914_p10) }
  0x42   :  { %916 = vmatpush1.msk.msra.mxu0 %vm155_vm1, %v116_v10  ;;  %1157 = vmatpush1.msk.msra.mxu1 %vm155_vm1, %v116_v10  ;;  %s1500_s24 = scalar_select %p365_p11, %s1718_s0, 8  ;;  %v1533_v52 = vld [vmem:[%s1722_s4 + $0x38] sm:$0xff]  ;;  %v1539_v58 = vld [vmem:[#allocation11 + $0x10] sm:$0xff]  ;;  %v1547_v63 = vld [vmem:[#allocation11 + $0x28] sm:$0xff] }
  0x43   :  { %917 = vmatmul.mubr.msk.f32.vlgmr.msra.gmra.mrb[0].mxu0 %vm130_vm2, %v104_v11  ;;  %921 = vmatmul.mubr.msk.f32.vlgmr.msra.gmra.mrb[0].mxu1 %vm130_vm2, %v108_v12  ;;  %v1541_v59 = vld [vmem:[#allocation11 + $0x18] sm:$0xff]  ;;  %v1545_v62 = vld [vmem:[#allocation11 + $0x20] sm:$0xff]  ;;  %v1549_v0 = vld [vmem:[#allocation11 + $0x30] sm:$0xff] }
  0x44   :  { %232 = vmatprep.mubr.f32.mxu0 %v1285_v7  ;;  %256 = vmatprep.mubr.f32.mxu1 %v1285_v7  ;;  %v1555_v2 = vld [vmem:[#allocation11 + $0x38] sm:$0xff]  ;;  %v1557_v3 = vld [vmem:[#allocation13] sm:$0xff]  ;;  %v1559_v4 = vld [vmem:[#allocation13 + $0x8] sm:$0xff] }
  0x45   :  { %v1565_v8 = vld [vmem:[#allocation13 + $0x18] sm:$0xff]  ;;  %v1567_v9 = vld [vmem:[#allocation13 + $0x20] sm:$0xff] }
  0x46   :  { %v1582_v19 = vld [vmem:[%s1726_s8] ss:$0 sm:$0xff] }
  0x47   :  { %918 = vmatmul.mubr.msk.f32.gmra.mrb[2].mxu0 %vm130_vm2, %v105_v13  ;;  %922 = vmatmul.mubr.msk.f32.gmra.mrb[2].mxu1 %vm130_vm2, %v109_v14  ;;  %v1571_v14 = vld [vmem:[#allocation13 + $0x28] sm:$0xff] }
  0x48   :  { %238 = vmatprep.mubr.f32.mxu0 %v1285_v7  ;;  %262 = vmatprep.mubr.f32.mxu1 %v1285_v7  ;;  %v1587_v20 = vld [vmem:[%s1719_s1] sm:$0xff] }
  0x4b   :  { %919 = vmatmul.mubr.msk.f32.gmra.mrb[4].mxu0 %vm130_vm2, %v106_v15  ;;  %923 = vmatmul.mubr.msk.f32.gmra.mrb[4].mxu1 %vm130_vm2, %v110_v16  ;;  %v1573_v15 = vld [vmem:[#allocation13 + $0x30] sm:$0xff]  ;;  %v1575_v16 = vld [vmem:[#allocation13 + $0x38] sm:$0xff] }
  0x4c   :  { %244 = vmatprep.mubr.f32.mxu0 %v1285_v7  ;;  %268 = vmatprep.mubr.f32.mxu1 %v1285_v7  ;;  %v1563_v7 = vld [vmem:[#allocation13 + $0x10] sm:$0xff] }
  0x4f   :  { %920 = vmatmul.mubr.msk.f32.gmra.mrb[6].mxu0 %vm130_vm2, %v107_v17  ;;  %924 = vmatmul.mubr.msk.f32.gmra.mrb[6].mxu1 %vm130_vm2, %v111_v18 }
 0x116   :  { %v228_v26 = vpop.f32.mrb[0].mxu0  ;;  %v252_v27 = vpop.f32.mrb[0].mxu1 }
 0x117   :  { %v229_v28 = vadd.f32 %v228_v26, %v1462_v24  ;;  %v253_v29 = vadd.f32 %v252_v27, %v1462_v24  ;;  %v230_v30 = vpop.f32.mrb[1].mxu0  ;;  %v254_v31 = vpop.f32.mrb[1].mxu1 }
 0x118   :  { %v231_v32 = vadd.f32 %v230_v30, %v1464_v25  ;;  %v255_v33 = vadd.f32 %v254_v31, %v1464_v25 }
 0x119   :  { %276 = vst.msk [vmem:[#allocation3] sm:$0xff] %vm98_vm0, %v229_v28  ;;  %280 = vst.msk [vmem:[#allocation3 + $0x20] sm:$0xff] %vm98_vm0, %v253_v29  ;;  %292 = vrot.lane.b32.xlu0 %v229_v28, %s1286_s2 }
 0x11a   :  { %324 = vst.msk [vmem:[#allocation5] sm:$0xff] %vm98_vm0, %v231_v32  ;;  %328 = vst.msk [vmem:[#allocation5 + $0x20] sm:$0xff] %vm98_vm0, %v255_v33  ;;  %v234_v34 = vpop.f32.mrb[2].mxu0  ;;  %v258_v35 = vpop.f32.mrb[2].mxu1 }
 0x11b   :  { %v235_v36 = vadd.f32 %v234_v34, %v1462_v24  ;;  %v259_v37 = vadd.f32 %v258_v35, %v1462_v24  ;;  %v236_v38 = vpop.f32.mrb[3].mxu0  ;;  %v260_v39 = vpop.f32.mrb[3].mxu1 }
 0x11c   :  { %v237_v40 = vadd.f32 %v236_v38, %v1464_v25  ;;  %v261_v41 = vadd.f32 %v260_v39, %v1464_v25 }
 0x11d   :  { %277 = vst.msk [vmem:[#allocation3 + $0x8] sm:$0xff] %vm98_vm0, %v235_v36  ;;  %281 = vst.msk [vmem:[#allocation3 + $0x28] sm:$0xff] %vm98_vm0, %v259_v37  ;;  %302 = vrot.lane.b32.xlu1 %v259_v37, %s1286_s2  ;;  %300 = vrot.lane.b32.xlu0 %v253_v29, %s1286_s2 }
 0x11e   :  { %325 = vst.msk [vmem:[#allocation5 + $0x8] sm:$0xff] %vm98_vm0, %v237_v40  ;;  %329 = vst.msk [vmem:[#allocation5 + $0x28] sm:$0xff] %vm98_vm0, %v261_v41  ;;  %v240_v48 = vpop.f32.mrb[4].mxu0  ;;  %v264_v49 = vpop.f32.mrb[4].mxu1 }
 0x11f   :  { %v241_v53 = vadd.f32 %v240_v48, %v1462_v24  ;;  %v242_v54 = vpop.f32.mrb[5].mxu0  ;;  %v265_v55 = vadd.f32 %v264_v49, %v1462_v24  ;;  %v266_v56 = vpop.f32.mrb[5].mxu1 }
 0x120   :  { %v243_v60 = vadd.f32 %v242_v54, %v1464_v25  ;;  %v267_v61 = vadd.f32 %v266_v56, %v1464_v25 }
 0x121   :  { %278 = vst.msk [vmem:[#allocation3 + $0x10] sm:$0xff] %vm98_vm0, %v241_v53  ;;  %282 = vst.msk [vmem:[#allocation3 + $0x30] sm:$0xff] %vm98_vm0, %v265_v55  ;;  %296 = vrot.lane.b32.xlu1 %v241_v53, %s1286_s2  ;;  %294 = vrot.lane.b32.xlu0 %v235_v36, %s1286_s2 }
 0x122   :  { %326 = vst.msk [vmem:[#allocation5 + $0x10] sm:$0xff] %vm98_vm0, %v243_v60  ;;  %v246_v5 = vpop.f32.mrb[6].mxu0  ;;  %330 = vst.msk [vmem:[#allocation5 + $0x30] sm:$0xff] %vm98_vm0, %v267_v61  ;;  %v270_v6 = vpop.f32.mrb[6].mxu1 }
 0x123   :  { %v247_v10 = vadd.f32 %v246_v5, %v1462_v24  ;;  %v248_v11 = vpop.f32.mrb[7].mxu0  ;;  %v271_v12 = vadd.f32 %v270_v6, %v1462_v24  ;;  %v272_v13 = vpop.f32.mrb[7].mxu1 }
 0x124   :  { %v249_v17 = vadd.f32 %v248_v11, %v1464_v25  ;;  %v273_v18 = vadd.f32 %v272_v13, %v1464_v25 }
 0x125   :  { %279 = vst.msk [vmem:[#allocation3 + $0x18] sm:$0xff] %vm98_vm0, %v247_v10  ;;  %283 = vst.msk [vmem:[#allocation3 + $0x38] sm:$0xff] %vm98_vm0, %v271_v12  ;;  %298 = vrot.lane.b32.xlu1 %v247_v10, %s1286_s2  ;;  %304 = vrot.lane.b32.xlu0 %v265_v55, %s1286_s2 }
 0x126   :  { %327 = vst.msk [vmem:[#allocation5 + $0x18] sm:$0xff] %vm98_vm0, %v249_v17  ;;  %331 = vst.msk [vmem:[#allocation5 + $0x38] sm:$0xff] %vm98_vm0, %v273_v18 }
 0x129   :  { %306 = vrot.lane.b32.xlu1 %v271_v12, %s1286_s2  ;;  %s1608_s2 = smov (!%p914_p10), 0  }
 0x18b   :  { %v293_v21 = vpop.permute.xlu0 %292 }
 0x18c   :  { %316 = vst.msk [vmem:[#allocation4] sm:$0xff] %vm98_vm0, %v293_v21 }
 0x18f   :  { %v303_v22 = vpop.permute.xlu1 %302  ;;  %v301_v23 = vpop.permute.xlu0 %300 }
 0x190   :  { %321 = vst.msk [vmem:[#allocation4 + $0x28] sm:$0xff] %vm98_vm0, %v303_v22  ;;  %320 = vst.msk [vmem:[#allocation4 + $0x20] sm:$0xff] %vm98_vm0, %v301_v23 }
 0x193   :  { %v297_v24 = vpop.permute.xlu1 %296  ;;  %v295_v25 = vpop.permute.xlu0 %294 }
 0x194   :  { %318 = vst.msk [vmem:[#allocation4 + $0x10] sm:$0xff] %vm98_vm0, %v297_v24  ;;  %317 = vst.msk [vmem:[#allocation4 + $0x8] sm:$0xff] %vm98_vm0, %v295_v25 }
 0x196   :  { %910 = sbr.rel (%p914_p10) target bundleno = 691 (0x2b3), region = 104 }
 0x197   :  { %v299_v26 = vpop.permute.xlu1 %298  ;;  %v305_v27 = vpop.permute.xlu0 %304 }
 0x198   :  { %319 = vst.msk [vmem:[#allocation4 + $0x18] sm:$0xff] %vm98_vm0, %v299_v26  ;;  %322 = vst.msk [vmem:[#allocation4 + $0x30] sm:$0xff] %vm98_vm0, %v305_v27 }
 0x19b   :  { %v307_v28 = vpop.permute.xlu1 %306 }
 0x19c   :  { %323 = vst.msk [vmem:[#allocation4 + $0x38] sm:$0xff] %vm98_vm0, %v307_v28 }
 0x19d LB: > { %v1095_v29 = vpack.c.bf16 %v1490_v43, %v1485_v42  ;;  %v1287_v30 = vmov 0.0|0.0   ;;  %v1107_v31 = vpack.c.bf16 %v1537_v57, %v1516_v47  ;;  %v1098_v32 = vpack.c.bf16 %v1509_v45, %v1495_v44  ;;  %v374_v48 = vld [vmem:[#allocation2] sm:$0xff]  ;;  %s927_s0 = sshll.u32 %s1275_s2, 3  ;;  %s1275_s2 = sphi %s1608_s2, %s370_s2  }
 0x19e   : > { %1094 = vmatprep.subr.bf16.mxu0 %v1287_v30  ;;  %1106 = vmatprep.subr.bf16.mxu1 %v1287_v30  ;;  %vm1288_vm3 = vmmov 0   ;;  %v1289_v33 = vmov 0.0   ;;  %v1110_v34 = vpack.c.bf16 %v1541_v59, %v1539_v58  ;;  %v616_v35 = vstv %s1275_s2  ;;  %s518_s30 = scalar_lea.vmem [#allocation3], %s927_s0  ;;  %s527_s17 = scalar_lea.vmem [#allocation4], %s927_s0 }
 0x19f   : > { %1096 = vmatpush3.bf16.msra.mxu0 %v1095_v29  ;;  %1006 = vmatprep.mubr.msk.f32.mxu0 %vm1288_vm3, %v1289_v33  ;;  %vm617_vm4 = vcmp.lt.s32.totalorder %v616_v35, %v1587_v20  ;;  %v1290_v36 = vmov 0   ;;  %v1101_v38 = vpack.c.bf16 %v1523_v50, %v1514_v46  ;;  %v1113_v39 = vpack.c.bf16 %v1547_v63, %v1545_v62  ;;  %v519_v56 = vld [vmem:[%s518_s30] sm:$0xff]  ;;  %s536_s18 = scalar_lea.vmem [#allocation5], %s927_s0  ;;  %s370_s2 = sadd.s32 1, %s1275_s2  }
 0x1a0   : > { %1097 = vmatprep.subr.bf16.mxu0 %v1287_v30  ;;  %1108 = vmatpush3.bf16.msra.mxu1 %v1107_v31  ;;  %v618_v37 = vsel %vm617_vm4, 1, %v1290_v36  ;;  %v1104_v40 = vpack.c.bf16 %v1533_v52, %v1528_v51  ;;  %v1116_v41 = vpack.c.bf16 %v1555_v2, %v1549_v0  ;;  %v1119_v49 = vpack.c.bf16 %v1559_v4, %v1557_v3  ;;  %v537_v28 = vld [vmem:[%s536_s18] sm:$0xff]  ;;  %p369_p12 = scmp.ge.s32.totalorder %s370_s2, %s1500_s24 }
 0x1a1   : > { %1109 = vmatprep.subr.bf16.mxu1 %v1287_v30  ;;  %1025 = vmatprep.mubr.msk.f32.mxu1 %vm1288_vm3, %v1289_v33  ;;  %v1122_v53 = vpack.c.bf16 %v1565_v8, %v1563_v7  ;;  %v1125_v54 = vpack.c.bf16 %v1571_v14, %v1567_v9  ;;  %v1128_v55 = vpack.c.bf16 %v1575_v16, %v1573_v15 }
 0x1a2   : > { %1182 = vset.pattern.permute.xlu0 %v1290_v36 }
 0x1a3   : > { %1099 = vmatpush3.bf16.msra.mxu0 %v1098_v32  ;;  %620 = vperm.xlu0 %1182, %v618_v37   ;;  %v528_v60 = vld [vmem:[%s527_s17] sm:$0xff] }
 0x1a4   : > { %1100 = vmatprep.subr.bf16.mxu0 %v1287_v30  ;;  %1111 = vmatpush3.bf16.msra.mxu1 %v1110_v34 }
 0x1a5   : > { %1112 = vmatprep.subr.bf16.mxu1 %v1287_v30 }
 0x1a7   : > { %1102 = vmatpush3.bf16.msra.mxu0 %v1101_v38 }
 0x1a8   : > { %1103 = vmatprep.subr.bf16.mxu0 %v1287_v30  ;;  %1114 = vmatpush3.bf16.msra.mxu1 %v1113_v39 }
 0x1a9   : > { %1115 = vmatprep.subr.bf16.mxu1 %v1287_v30 }
 0x1ab   : > { %1105 = vmatpush3.bf16.msra.mxu0 %v1104_v40 }
 0x1ac   : > { %1117 = vmatpush3.bf16.msra.mxu1 %v1116_v41  ;;  %1118 = vmatprep.subr.bf16.mxu0 %v1287_v30 }
 0x1ae   : > { %1007 = vmatmul.mubr.msk.f32.vlgmr.msra.gmra.mrb[0].mxu0 %vm98_vm0, %v374_v48 }
 0x1af   : > { %1120 = vmatpush3.bf16.msra.mxu0 %v1119_v49  ;;  %1026 = vmatmul.mubr.msk.f32.vlgmr.msra.gmra.mrb[0].mxu1 %vm98_vm0, %v374_v48 }
 0x1b0   : > { %1121 = vmatprep.subr.bf16.mxu0 %v1287_v30  ;;  %1044 = vmatprep.mubr.msk.f32.mxu0 %vm1288_vm3, %v1289_v33 }
 0x1b3   : > { %1123 = vmatpush3.bf16.msra.mxu0 %v1122_v53 }
 0x1b4   : > { %1124 = vmatprep.subr.bf16.mxu0 %v1287_v30 }
 0x1b7   : > { %1126 = vmatpush3.bf16.msra.mxu0 %v1125_v54 }
 0x1b8   : > { %1127 = vmatprep.subr.bf16.mxu0 %v1287_v30 }
 0x1bb   : > { %1129 = vmatpush3.bf16.msra.mxu0 %v1128_v55 }
 0x1be   : > { %1045 = vmatmul.mubr.msk.f32.vlgmr.msra.gmra.mrb[2].mxu0 %vm98_vm0, %v374_v48 }
 0x222   : > { %v621_v33 = vpop.permute.xlu0 %620 }
 0x223   : > { %vm622_vm5 = vcmp.eq.s32.totalorder %v621_v33, 1 }
 0x281   : > { %v444_v61 = vpop.f32.mrb[0].mxu0 }
 0x282   : > { %v520_v5 = vadd.f32 %v519_v56, %v444_v61  ;;  %v1008_v6 = vpop.f32.mrb[1].mxu0  ;;  %v514_v10 = vpop.f32.mrb[0].mxu1 }
 0x283   : > { %v529_v11 = vadd.f32 %v528_v60, %v514_v10  ;;  %v1027_v12 = vpop.f32.mrb[1].mxu1 }
 0x284   : > { %v930_v13 = vmul.f32 -1.442695, %v520_v5 }
 0x285   : > { %v931_v17 = vmul.f32 -1.442695, %v529_v11 }
 0x286   : > { %1183 = vpow2.f32 %v930_v13 }
 0x287   : > { %1185 = vpow2.f32 %v931_v17 }
 0x290   : > { %v1184_v18 = vpop.eup %1183 }
 0x291   : > { %v524_v21 = vadd.f32 1.0, %v1184_v18  ;;  %v604_v22 = vpop.f32.mrb[2].mxu0  ;;  %v1186_v24 = vpop.eup %1185 }
 0x292   : > { %v1046_v23 = vpop.f32.mrb[3].mxu0  ;;  %v533_v25 = vadd.f32 1.0, %v1186_v24  ;;  %v605_v26 = vadd.f32 %v1582_v19, %v604_v22 }
 0x293   : > { %1187 = vrcp.f32 %v524_v21 }
 0x294   : > { %1189 = vrcp.f32 %v533_v25 }
 0x29d   : > { %v1188_v27 = vpop.eup %1187 }
 0x29e   : > { %v608_v29 = vmul.f32 %v1188_v27, %v605_v26  ;;  %v1190_v31 = vpop.eup %1189 }
 0x29f   : > { %v611_v32 = vsub.f32 1.0, %v1190_v31  ;;  %v613_v36 = vmul.f32 %v1190_v31, %v374_v48 }
 0x2a0   : > { %v609_v30 = vadd.f32 %v608_v29, %v537_v28 }
 0x2a2   : > { %1191 = vtanh.f32 %v609_v30 }
 0x2ac   : > { %v1192_v34 = vpop.eup %1191  ;;  %372 = sbr.rel (!%p369_p12) target bundleno = 413 (0x19d), region = 110 }
 0x2ad   : > { %v612_v35 = vmul.f32 %v1192_v34, %v611_v32 }
 0x2af   : > { %v614_v37 = vadd.f32 %v613_v36, %v612_v35 }
 0x2b1   : > { %v623_v38 = vsel %vm622_vm5, %v614_v37, %v374_v48 }
 0x2b2   : > { %624 = vst.msk [vmem:[#allocation2] sm:$0xff] %vm98_vm0, %v623_v38 }
 0x2b3 PF:  { %1047 = vmatprep.subr.mxu0 %v1284_v1  ;;  %v630_v39 = vld [vmem:[%s1727_s9] sm:$0xf]  ;;  %vm642_vm6 = vcmask 1043456   ;;  %vm638_vm7 = vcmask 31744   ;;  %vm1291_vm8 = vmmov 0   ;;  %v718_v43 = vld [vmem:[%s1729_s11 + $0x8] sm:$0xff] }
 0x2b4   :  { %v629_v40 = vld [vmem:[%s1732_s14] sm:$0xff]  ;;  %1048 = vmatpush3.msk.msra.mxu0 %vm642_vm6, %v630_v39  ;;  %1049 = vmatprep.mubr.msk.f32.mxu0 %vm1291_vm8, %v1284_v1  ;;  %v1292_v45 = vmov 0.0|0.0   ;;  %v726_v47 = vld [vmem:[%s1730_s12 + $0x8] sm:$0xff]  ;;  %v719_v51 = vld [vmem:[%s1729_s11 + $0x10] sm:$0xff]  ;;  %vm894_vm9 = vcmask 7168  }
 0x2b5   :  { %v717_v42 = vld [vmem:[%s1729_s11] sm:$0xff]  ;;  %1050 = vmatmul.mubr.msk.f32.vlgmr.msra.gmra.mrb[0].mxu0 %vm638_vm7, %v629_v40  ;;  %1142 = vmatprep.subr.bf16.mxu0 %v1292_v45  ;;  %v720_v52 = vld [vmem:[%s1729_s11 + $0x18] sm:$0xff]  ;;  %v727_v58 = vld [vmem:[%s1730_s12 + $0x10] sm:$0xff] }
 0x2b6   :  { %v725_v44 = vld [vmem:[%s1730_s12] sm:$0xff]  ;;  %v1143_v46 = vpack.c.bf16 %v718_v43, %v717_v42  ;;  %1130 = vmatprep.subr.bf16.mxu1 %v1292_v45  ;;  %1087 = vmatprep.mubr.msk.f32.mxu0 %vm1291_vm8, %v1284_v1  ;;  %v1146_v57 = vpack.c.bf16 %v720_v52, %v719_v51  ;;  %v722_v63 = vld [vmem:[%s1729_s11 + $0x28] sm:$0xff]  ;;  %v723_v4 = vld [vmem:[%s1729_s11 + $0x30] sm:$0xff] }
 0x2b7   :  { %v1131_v50 = vpack.c.bf16 %v726_v47, %v725_v44  ;;  %1068 = vmatprep.mubr.msk.f32.mxu1 %vm1291_vm8, %v1284_v1  ;;  %v728_v1 = vld [vmem:[%s1730_s12 + $0x18] sm:$0xff]  ;;  %v721_v62 = vld [vmem:[%s1729_s11 + $0x20] sm:$0xff]  ;;  %v730_v3 = vld [vmem:[%s1730_s12 + $0x28] sm:$0xff] }
 0x2b8   :  { %1144 = vmatpush3.bf16.msra.mxu0 %v1143_v46  ;;  %v1134_v59 = vpack.c.bf16 %v728_v1, %v727_v58  ;;  %v729_v0 = vld [vmem:[%s1730_s12 + $0x20] sm:$0xff]  ;;  %v1149_v2 = vpack.c.bf16 %v722_v63, %v721_v62  ;;  %v724_v7 = vld [vmem:[%s1729_s11 + $0x38] sm:$0xff]  ;;  %v731_v9 = vld [vmem:[%s1730_s12 + $0x30] sm:$0xff] }
 0x2b9   :  { %1132 = vmatpush3.bf16.msra.mxu1 %v1131_v50  ;;  %1145 = vmatprep.subr.bf16.mxu0 %v1292_v45  ;;  %v1137_v8 = vpack.c.bf16 %v730_v3, %v729_v0  ;;  %v732_v14 = vld [vmem:[%s1730_s12 + $0x38] sm:$0xff]  ;;  %v1152_v15 = vpack.c.bf16 %v724_v7, %v723_v4  ;;  %v628_v19 = vld [vmem:[#allocation2] sm:$0xff]  ;;  %v938_v60 = vld [vmem:[#allocation8] ss:$0 sm:$0xff] }
 0x2ba   :  { %1133 = vmatprep.subr.bf16.mxu1 %v1292_v45  ;;  %v1140_v16 = vpack.c.bf16 %v732_v14, %v731_v9  ;;  %v933_v20 = vld [vmem:[%s1728_s10] ss:$0 sm:$0xff] }
 0x2bc   :  { %1147 = vmatpush3.bf16.msra.mxu0 %v1146_v57 }
 0x2bd   :  { %1135 = vmatpush3.bf16.msra.mxu1 %v1134_v59  ;;  %1148 = vmatprep.subr.bf16.mxu0 %v1292_v45 }
 0x2be   :  { %1136 = vmatprep.subr.bf16.mxu1 %v1292_v45 }
 0x2c0   :  { %1150 = vmatpush3.bf16.msra.mxu0 %v1149_v2 }
 0x2c1   :  { %1138 = vmatpush3.bf16.msra.mxu1 %v1137_v8  ;;  %1151 = vmatprep.subr.bf16.mxu0 %v1292_v45 }
 0x2c2   :  { %1139 = vmatprep.subr.bf16.mxu1 %v1292_v45 }
 0x2c4   :  { %1153 = vmatpush3.bf16.msra.mxu0 %v1152_v15 }
 0x2c5   :  { %1141 = vmatpush3.bf16.msra.mxu1 %v1140_v16 }
 0x2c7   :  { %1088 = vmatmul.mubr.msk.f32.vlgmr.msra.gmra.mrb[2].mxu0 %vm98_vm0, %v628_v19 }
 0x388   :  { %v712_v41 = vpop.f32.mrb[0].mxu0 }
 0x389   :  { %v713_v48 = vadd.f32 %v933_v20, %v712_v41  ;;  %v1051_v49 = vpop.f32.mrb[1].mxu0 }
 0x38b   :  { %1193 = vtanh.f32 %v713_v48 }
 0x395   :  { %v1194_v53 = vpop.eup %1193 }
 0x396   :  { %1069 = vmatmul.mubr.msk.f32.vlgmr.msra.gmra.mrb[0].mxu1 %vm98_vm0, %v1194_v53 }
 0x39a   :  { %v876_v54 = vpop.f32.mrb[2].mxu0 }
 0x39b   :  { %v1089_v55 = vpop.f32.mrb[3].mxu0 }
 0x469   :  { %v803_v56 = vpop.f32.mrb[0].mxu1 }
 0x46a   :  { %v877_v61 = vadd.f32 %v876_v54, %v803_v56  ;;  %v1070_v5 = vpop.f32.mrb[1].mxu1 }
 0x46c   :  { %v887_v6 = vadd.f32 %v938_v60, %v877_v61 }
 0x46e   :  { %v939_v10 = vmul.f32 -1.442695, %v887_v6 }
 0x470   :  { %1195 = vpow2.f32 %v939_v10 }
 0x47a   :  { %v1196_v11 = vpop.eup %1195 }
 0x47b   :  { %v891_v12 = vadd.f32 1.0, %v1196_v11 }
 0x47d   :  { %1197 = vrcp.f32 %v891_v12 }
 0x487   :  { %v1198_v13 = vpop.eup %1197 }
 0x488   :  { %895 = vst.msk [vmem:[%s1733_s15] sm:$0xff] %vm894_vm9, %v1198_v13 }
 0x489   :  { %900 = vsyncpa [#allocation10], 1 }
 0x48a   :  { %901 = vsyncpa [#allocation12], 1 }

</bundles_post_ra>
